<compile_context>
chip_gen: v7x
topology: tpu7x:2x2x1
jax: 0.10.0
libtpu: 0.0.40
codegen_flags: <defaults>
</compile_context>

<pallas_src>
import math

import jax
import jax.numpy as jnp
from jax.experimental import pallas as pl
from jax.experimental.pallas import tpu as pltpu

LANE = 128  # TPU lane width; hidden and class dims are padded to multiples of this.


def _round_up(v, m):
    return ((v + m - 1) // m) * m


def gcn_kernel(x_ref, adj_ref, w1_ref, b1_ref, w2_ref, b2_ref, out_ref):
    # One grid step == one graph of the batch; squeeze the leading block dim.
    x = x_ref[0]        # (N, NFEAT)
    adj = adj_ref[0]    # (N, N)

    # ---- GraphConvolution 1: support = x @ W1 ; h = relu(adj @ support + b1) ----
    # Hidden dim is zero-padded to LANE lanes: padded W1 columns are 0 and padded
    # b1 lanes are 0, so padded h lanes are exactly relu(0) = 0 (lane-dense vregs,
    # no masked loads/stores on the intermediates).
    support1 = jnp.dot(x, w1_ref[...], preferred_element_type=jnp.float32)
    h = jnp.dot(adj, support1, preferred_element_type=jnp.float32) + b1_ref[...]
    h = jnp.maximum(h, 0.0)

    # Dropout: identity at inference (training=False).
    # TODO(synk): training-mode dropout (pltpu.prng_random_bits mask) not implemented.

    # ---- GraphConvolution 2 (class dim padded to LANE lanes):
    # padded W2 rows are zero (so the zero padded-hidden lanes contribute nothing),
    # padded W2 columns are zero and padded b2 lanes are -1e30, so padded logits
    # sit at ~-1e30 and vanish from both the max and the exp-sum. ----
    support2 = jnp.dot(h, w2_ref[...], preferred_element_type=jnp.float32)
    z = jnp.dot(adj, support2, preferred_element_type=jnp.float32) + b2_ref[...]

    # ---- log_softmax over dim=1 (class axis, padded lanes self-exclude) ----
    m = jnp.max(z, axis=1, keepdims=True)
    shifted = z - m
    lse = jnp.log(jnp.sum(jnp.exp(shifted), axis=1, keepdims=True))
    out_ref[0] = shifted - lse


def pad_gcn_params(w1, b1, w2, b2):
    """One-time (init-time) lane padding of the GCN weights.

    Hoisted out of the per-forward path so the forward does no wrapper-side
    XLA prep on every call.
    """
    nfeat, nhid = w1.shape
    _, nclass = w2.shape
    h_pad = _round_up(nhid, LANE)
    c_pad = _round_up(nclass, LANE)

    w1p = jnp.zeros((nfeat, h_pad), jnp.float32).at[:, :nhid].set(w1)
    b1p = jnp.zeros((1, h_pad), jnp.float32).at[:, :nhid].set(b1)
    w2p = jnp.zeros((h_pad, c_pad), jnp.float32).at[:nhid, :nclass].set(w2)
    b2p = jnp.full((1, c_pad), -1e30, jnp.float32).at[:, :nclass].set(b2)
    return w1p, b1p, w2p, b2p


@jax.jit
def gcn_forward_batched(x, adj, w1p, b1p, w2p, b2p):
    """Batched GCN forward.

    x:   (B, N, NFEAT) node features per graph
    adj: (B, N, N)     normalized adjacency per graph
    Returns lane-dense padded log-probs (B, N, C_PAD); consumers slice
    [..., :nclass] (kept padded here so the kernel writeback stays a
    full-width unmasked store).
    """
    B, n, nfeat = x.shape
    h_pad = w1p.shape[1]
    c_pad = w2p.shape[1]

    return pl.pallas_call(
        gcn_kernel,
        out_shape=jax.ShapeDtypeStruct((B, n, c_pad), jnp.float32),
        grid=(B,),
        in_specs=[
            pl.BlockSpec((1, n, nfeat), lambda b: (b, 0, 0)),   # x: one graph / step
            pl.BlockSpec((1, n, n), lambda b: (b, 0, 0)),       # adj: one graph / step
            pl.BlockSpec((nfeat, h_pad), lambda b: (0, 0)),     # W1 (resident across steps)
            pl.BlockSpec((1, h_pad), lambda b: (0, 0)),         # b1
            pl.BlockSpec((h_pad, c_pad), lambda b: (0, 0)),     # W2
            pl.BlockSpec((1, c_pad), lambda b: (0, 0)),         # b2
        ],
        out_specs=pl.BlockSpec((1, n, c_pad), lambda b: (b, 0, 0)),
        compiler_params=pltpu.CompilerParams(
            dimension_semantics=("parallel",)),  # batch axis -> megacore sharding on v7x
    )(x, adj, w1p, b1p, w2p, b2p)


def init_gc_params(key, fan_in, fan_out):
    # Matches GraphConvolution.reset_parameters: uniform(-stdv, stdv), stdv = 1/sqrt(out)
    stdv = 1.0 / math.sqrt(fan_out)
    kw, kb = jax.random.split(key)
    w = jax.random.uniform(kw, (fan_in, fan_out), jnp.float32, -stdv, stdv)
    b = jax.random.uniform(kb, (1, fan_out), jnp.float32, -stdv, stdv)
    return w, b


def make_normalized_adj(key, n):
    # Deterministic symmetric adjacency with self-loops, symmetrically normalized
    # (standard GCN preprocessing; plain-JAX glue, not the hot path).
    a = (jax.random.uniform(key, (n, n)) < 0.05).astype(jnp.float32)
    a = jnp.maximum(a, a.T) + jnp.eye(n, dtype=jnp.float32)
    deg = jnp.sum(a, axis=1)
    d_inv_sqrt = 1.0 / jnp.sqrt(deg)
    return a * d_inv_sqrt[:, None] * d_inv_sqrt[None, :]


if __name__ == "__main__":
    key = jax.random.PRNGKey(0)
    k_x, k_adj, k_gc1, k_gc2 = jax.random.split(key, 4)

    B = 4         # graphs per batch (one pallas_call, "parallel" grid axis)
    N = 128       # number of graph nodes
    NFEAT = 32    # input feature dim
    NHID = 32     # hidden dim (lane-padded to 128 inside the kernel)
    NCLASS = 8    # number of classes (lane-padded to 128 inside the kernel)

    # Batched node features and per-graph adjacencies.
    x = jax.random.normal(k_x, (B, N, NFEAT), jnp.float32)
    adj = jax.vmap(make_normalized_adj, in_axes=(0, None))(
        jax.random.split(k_adj, B), N)

    # GraphConvolution parameters (deterministic init), padded ONCE at init time.
    w1, b1 = init_gc_params(k_gc1, NFEAT, NHID)
    w2, b2 = init_gc_params(k_gc2, NHID, NCLASS)
    w1p, b1p, w2p, b2p = pad_gcn_params(w1, b1, w2, b2)

    out_padded = gcn_forward_batched(x, adj, w1p, b1p, w2p, b2p)
    out_padded = jax.block_until_ready(out_padded)
    out = out_padded[:, :, :NCLASS]  # single slice at the consumer

    # Sanity check against plain-JAX reference of the same forward.
    h_ref = jnp.maximum(jnp.einsum("bij,bjk->bik", adj, x @ w1) + b1, 0.0)
    z_ref = jnp.einsum("bij,bjk->bik", adj, h_ref @ w2) + b2
    ref = jax.nn.log_softmax(z_ref, axis=-1)
    assert out.shape == (B, N, NCLASS)
    assert jnp.max(jnp.abs(out - ref)) < 1e-4

    print("KERNEL_OK")
</pallas_src>

<mosaic_0001>
module attributes {stable_mosaic.version = 11 : i64} {
  func.func @gcn_kernel(%arg0: i32, %arg1: memref<1x128x32xf32, #tpu.memory_space<vmem>>, %arg2: memref<1x128x128xf32, #tpu.memory_space<vmem>>, %arg3: memref<32x128xf32, #tpu.memory_space<vmem>>, %arg4: memref<1x128xf32, #tpu.memory_space<vmem>>, %arg5: memref<128x128xf32, #tpu.memory_space<vmem>>, %arg6: memref<1x128xf32, #tpu.memory_space<vmem>>, %arg7: memref<1x128x128xf32, #tpu.memory_space<vmem>>) attributes {dimension_semantics = [#tpu.dimension_semantics<parallel>], iteration_bounds = array<i64: 4>, scalar_prefetch = 0 : i64, scratch_operands = 0 : i64, tpu.core_type = #tpu.core_type<tc>, window_params = [{transform_indices = @transform_0, window_bounds = array<i64: 1, 128, 32>}, {transform_indices = @transform_1, window_bounds = array<i64: 1, 128, 128>}, {pipeline_mode = #tpu.pipeline_mode<synchronous>, transform_indices = @transform_2, window_bounds = array<i64: 32, 128>}, {pipeline_mode = #tpu.pipeline_mode<synchronous>, transform_indices = @transform_3, window_bounds = array<i64: 1, 128>}, {pipeline_mode = #tpu.pipeline_mode<synchronous>, transform_indices = @transform_4, window_bounds = array<i64: 128, 128>}, {pipeline_mode = #tpu.pipeline_mode<synchronous>, transform_indices = @transform_5, window_bounds = array<i64: 1, 128>}, {transform_indices = @transform_6, window_bounds = array<i64: 1, 128, 128>}]} {
    %c0 = arith.constant 0 : index
    %c0_0 = arith.constant 0 : index
    %c0_1 = arith.constant 0 : index
    %0 = vector.load %arg1[%c0, %c0_0, %c0_1] : memref<1x128x32xf32, #tpu.memory_space<vmem>>, vector<1x128x32xf32>
    %1 = vector.shape_cast %0 : vector<1x128x32xf32> to vector<128x32xf32>
    %c0_2 = arith.constant 0 : index
    %c0_3 = arith.constant 0 : index
    %c0_4 = arith.constant 0 : index
    %2 = vector.load %arg2[%c0_2, %c0_3, %c0_4] : memref<1x128x128xf32, #tpu.memory_space<vmem>>, vector<1x128x128xf32>
    %3 = vector.shape_cast %2 : vector<1x128x128xf32> to vector<128x128xf32>
    %c0_5 = arith.constant 0 : index
    %c0_6 = arith.constant 0 : index
    %4 = vector.load %arg3[%c0_5, %c0_6] : memref<32x128xf32, #tpu.memory_space<vmem>>, vector<32x128xf32>
    %cst = arith.constant dense<0.000000e+00> : vector<128x128xf32>
    %5 = tpu.matmul %1, %4, %cst {dimension_numbers = #tpu.dot_dimension_numbers<[1], [0], [0], [1], [0, 0, 1, 1], [], []>} : vector<128x32xf32>, vector<32x128xf32>, vector<128x128xf32> -> vector<128x128xf32>
    %cst_7 = arith.constant dense<0.000000e+00> : vector<128x128xf32>
    %6 = tpu.matmul %3, %5, %cst_7 {dimension_numbers = #tpu.dot_dimension_numbers<[1], [0], [0], [1], [0, 0, 1, 1], [], []>} : vector<128x128xf32>, vector<128x128xf32>, vector<128x128xf32> -> vector<128x128xf32>
    %c0_8 = arith.constant 0 : index
    %c0_9 = arith.constant 0 : index
    %7 = vector.load %arg4[%c0_8, %c0_9] : memref<1x128xf32, #tpu.memory_space<vmem>>, vector<1x128xf32>
    %8 = vector.broadcast %7 : vector<1x128xf32> to vector<128x128xf32>
    %9 = arith.addf %6, %8 : vector<128x128xf32>
    %cst_10 = arith.constant 0.000000e+00 : f32
    %10 = vector.broadcast %cst_10 : f32 to vector<128x128xf32>
    %11 = arith.maximumf %9, %10 : vector<128x128xf32>
    %c0_11 = arith.constant 0 : index
    %c0_12 = arith.constant 0 : index
    %12 = vector.load %arg5[%c0_11, %c0_12] : memref<128x128xf32, #tpu.memory_space<vmem>>, vector<128x128xf32>
    %cst_13 = arith.constant dense<0.000000e+00> : vector<128x128xf32>
    %13 = tpu.matmul %11, %12, %cst_13 {dimension_numbers = #tpu.dot_dimension_numbers<[1], [0], [0], [1], [0, 0, 1, 1], [], []>} : vector<128x128xf32>, vector<128x128xf32>, vector<128x128xf32> -> vector<128x128xf32>
    %cst_14 = arith.constant dense<0.000000e+00> : vector<128x128xf32>
    %14 = tpu.matmul %3, %13, %cst_14 {dimension_numbers = #tpu.dot_dimension_numbers<[1], [0], [0], [1], [0, 0, 1, 1], [], []>} : vector<128x128xf32>, vector<128x128xf32>, vector<128x128xf32> -> vector<128x128xf32>
    %c0_15 = arith.constant 0 : index
    %c0_16 = arith.constant 0 : index
    %15 = vector.load %arg6[%c0_15, %c0_16] : memref<1x128xf32, #tpu.memory_space<vmem>>, vector<1x128xf32>
    %16 = vector.broadcast %15 : vector<1x128xf32> to vector<128x128xf32>
    %17 = arith.addf %14, %16 : vector<128x128xf32>
    %cst_17 = arith.constant dense<0xFF800000> : vector<128xf32>
    %18 = vector.multi_reduction <maximumf>, %17, %cst_17 [1] : vector<128x128xf32> to vector<128xf32>
    %19 = vector.shape_cast %18 : vector<128xf32> to vector<128x1xf32>
    %20 = vector.broadcast %19 : vector<128x1xf32> to vector<128x128xf32>
    %21 = arith.subf %17, %20 : vector<128x128xf32>
    %22 = math.exp %21 : vector<128x128xf32>
    %cst_18 = arith.constant dense<0.000000e+00> : vector<128xf32>
    %23 = vector.multi_reduction <add>, %22, %cst_18 [1] : vector<128x128xf32> to vector<128xf32>
    %24 = vector.shape_cast %23 : vector<128xf32> to vector<128x1xf32>
    %25 = math.log %24 : vector<128x1xf32>
    %26 = vector.broadcast %25 : vector<128x1xf32> to vector<128x128xf32>
    %27 = arith.subf %21, %26 : vector<128x128xf32>
    %c0_19 = arith.constant 0 : index
    %c0_20 = arith.constant 0 : index
    %c0_21 = arith.constant 0 : index
    %28 = vector.load %arg7[%c0_19, %c0_20, %c0_21] : memref<1x128x128xf32, #tpu.memory_space<vmem>>, vector<1x128x128xf32>
    %29 = vector.shape_cast %28 : vector<1x128x128xf32> to vector<128x128xf32>
    %30 = vector.shape_cast %27 : vector<128x128xf32> to vector<1x128x128xf32>
    tpu.vector_store %arg7[%c0_19, %c0_20, %c0_21], %30 {strides = array<i32>} : memref<1x128x128xf32, #tpu.memory_space<vmem>>, vector<1x128x128xf32>,
    return
  }
  func.func @transform_0(%arg0: i32) -> (i32, i32, i32) {
    %c0_i32 = arith.constant 0 : i32
    %c0_i32_0 = arith.constant 0 : i32
    %c0_i32_1 = arith.constant 0 : i32
    return %arg0, %c0_i32, %c0_i32_0 : i32, i32, i32
  }
  func.func @transform_1(%arg0: i32) -> (i32, i32, i32) {
    %c0_i32 = arith.constant 0 : i32
    %c0_i32_0 = arith.constant 0 : i32
    %c0_i32_1 = arith.constant 0 : i32
    return %arg0, %c0_i32, %c0_i32_0 : i32, i32, i32
  }
  func.func @transform_2(%arg0: i32) -> (i32, i32) {
    %c0_i32 = arith.constant 0 : i32
    %c0_i32_0 = arith.constant 0 : i32
    %c0_i32_1 = arith.constant 0 : i32
    return %c0_i32, %c0_i32_0 : i32, i32
  }
  func.func @transform_3(%arg0: i32) -> (i32, i32) {
    %c0_i32 = arith.constant 0 : i32
    %c0_i32_0 = arith.constant 0 : i32
    %c0_i32_1 = arith.constant 0 : i32
    return %c0_i32, %c0_i32_0 : i32, i32
  }
  func.func @transform_4(%arg0: i32) -> (i32, i32) {
    %c0_i32 = arith.constant 0 : i32
    %c0_i32_0 = arith.constant 0 : i32
    %c0_i32_1 = arith.constant 0 : i32
    return %c0_i32, %c0_i32_0 : i32, i32
  }
  func.func @transform_5(%arg0: i32) -> (i32, i32) {
    %c0_i32 = arith.constant 0 : i32
    %c0_i32_0 = arith.constant 0 : i32
    %c0_i32_1 = arith.constant 0 : i32
    return %c0_i32, %c0_i32_0 : i32, i32
  }
  func.func @transform_6(%arg0: i32) -> (i32, i32, i32) {
    %c0_i32 = arith.constant 0 : i32
    %c0_i32_0 = arith.constant 0 : i32
    %c0_i32_1 = arith.constant 0 : i32
    return %arg0, %c0_i32, %c0_i32_0 : i32, i32, i32
  }
}

</mosaic_0001>

<bundles_post_ra>
// kernel: gcn_forward_batched.1
= control target key start
LH: loop header
LB: loop body
LE: loop exit
PB: predicated region body
PF: predicated region fallthrough
CT: control target
= control target key end

     0   :  { %11 = vsyncpa [#allocation3], 0  ;;  %s2417_s0 = inlined_call_operand.vmem [shape: f32[4,128,32], index: 0, kind: input, shape index: {}]   ;;  %s2418_s1 = inlined_call_operand.vmem [shape: f32[4,128,128], index: 1, kind: input, shape index: {}]   ;;  %s2419_s2 = inlined_call_operand.hbm [shape: f32[32,128], index: 2, kind: input, shape index: {}]   ;;  %s2420_s3 = inlined_call_operand.vmem [shape: f32[1,128], index: 3, kind: input, shape index: {}]   ;;  %s2421_s4 = inlined_call_operand.vmem [shape: f32[128,128], index: 4, kind: input, shape index: {}]   ;;  %s2422_s5 = inlined_call_operand.vmem [shape: f32[1,128], index: 5, kind: input, shape index: {}]   ;;  %s2423_s6 = inlined_call_operand.hbm [shape: f32[4,128,128], index: 6, kind: output, shape index: {}]  }
   0x1   :  { %12 = vsyncpa [#allocation4], 0 }
   0x2   :  { %14 = vsyncpa [#allocation4 + $0x1], 0  ;;  %s2000_s21 = smov 0   ;;  %s2002_s22 = smov 0  }
   0x3   :  { %s2004_s23 = smov 0   ;;  %s2006_s24 = smov 0  }
   0x4 LB: > { %s2021_s25 = sadd.s32 4294967295, %s1957_s24   ;;  %s1272_s26 = sadd.s32 4294967294, %s1957_s24   ;;  %s1957_s24 = sphi %s2006_s24, %s2439_s24   ;;  %s1953_s23 = sphi %s2004_s23, %s2438_s23   ;;  %s1949_s22 = sphi %s2002_s22, %s2437_s22   ;;  %s1945_s21 = sphi %s2000_s21, %s2436_s21  }
   0x5   : > { %s2025_s27 = sadd.s32 1, %s1957_s24   ;;  %s163_s28 = sadd.s32 1, %s1953_s23 }
   0x6   : > { %s160_s29 = ssub.s32 %s1957_s24, %s2025_s27  ;;  %p173_p0 = scmp.ne.s32.totalorder %s1953_s23, %s1949_s22 }
   0x7   : > { %p161_p1 = scmp.eq.s32.totalorder %s160_s29, 0  ;;  %p174_p2 = scmp.eq.s32.totalorder %s2021_s25, 3 }
   0x8   : > { %p179_p3 = scmp.ne.s32.totalorder %s1949_s22, %s1945_s21  ;;  %p180_p4 = scmp.eq.s32.totalorder %s1272_s26, 3 }
   0x9   : > { %s2036_s30 = scalar_select %p161_p1, %s1953_s23, %s163_s28  }
   0xa   : > { %p2038_p5 = por %p174_p2, %p173_p0  ;;  %p2042_p6 = por %p180_p4, %p179_p3 }
   0xb   : > { %p1273_p7 = scmp.ge.s32.totalorder %s1957_s24, 1  ;;  %p187_p8 = scmp.lt.s32.totalorder %s1957_s24, 5 }
   0xc   : > { %s2427_s7 = scalar_select %p2038_p5, 1, 0 }
   0xd   : > { %s2428_s8 = scalar_select %p2042_p6, 1, 0 }
   0xe   : > { %p2424_p9 = scmp.eq.s32.totalorder %s2021_s25, 0  ;;  %p2049_p10 = pnand %p1273_p7, %p187_p8 }
   0xf   : > { %s1959_s10 = smov [#allocation2]   ;;  %s1863_s15 = scalar_lea.hbm %s2419_s2, 512 }
  0x10   : > { %s2429_s9 = scalar_select %p2049_p10, 1, 0 }
  0x11   : > { %s199_s11 = sshll.u32 %s1959_s10, 4  ;;  %p1751_p11 = pneg %p2049_p10  ;;  %s200_s11 = int_to_ptr.vmem [resolvable:$true] %s199_s11 }
  0x12   : > { %p1864_p13 = scmp.ne.s32.totalorder %s2419_s2, %s1863_s15  ;;  %p1870_p3 = scmp.lt.u32.totalorder %s1863_s15, %s2419_s2 }
  0x13   : > { %p2057_p12 = pnand %p2424_p9, %p1751_p11 }
  0x15   : > { %p1865_p0 = pneg %p2057_p12 }
  0x17   : > { %p1866_p1 = pnand %p1865_p0, %p1864_p13 }
  0x19   : > { %p1867_p2 = pneg %p1866_p1 }
  0x1b   : > { %p1872_p4 = pnand %p1870_p3, %p1867_p2 }
  0x1d   : > { %1875 = shalt.err (!%p1872_p4)
}
  0x1e   : > { %s1876_s20 = scalar_lea.vmem %s200_s11, 512  ;;  %p1884_p9 = scmp.lt.s32.totalorder %s200_s11, %s200_s11 }
  0x1f   : > { %p1877_p7 = scmp.ne.s32.totalorder %s200_s11, %s1876_s20  ;;  %p1885_p6 = scmp.lt.s32.totalorder %s1876_s20, %s1876_s20 }
  0x21   : > { %p1879_p8 = pnand %p1877_p7, %p1865_p0  ;;  %p1886_p5 = por %p1885_p6, %p1884_p9 }
  0x23   : > { %p1880_p11 = pneg %p1879_p8 }
  0x25   : > { %p1887_p10 = pnand %p1886_p5, %p1880_p11 }
  0x27   : > { %1890 = shalt.err (!%p1887_p10)
}
  0x28   : > { %s1960_s26 = smov 128   ;;  %s1961_s28 = smov 8  }
  0x29   : > { %1754 = dma.hbm_to_vmem [thread:$0]  (!%p2057_p12), %s2419_s2, 512, %s200_s11, [#allocation3], %s1960_s26, %s1960_s26, %s1961_s28  }
  0x2a   : > { %p2431_p13 = scmp.ne.s32.totalorder %s2429_s9, 0 }
  0x2b   : > { %p2432_p1 = scmp.eq.s32.totalorder (!%p2431_p13), %s2021_s25, 0 }
  0x2c   : > { %240 = sbr.rel (%p2431_p13) target bundleno = 1352 (0x548), region = 44 }
  0x33   : > { %1936 = dma.done.wait (%p2432_p1), [#allocation3], 512   ;;  %p2433_p0 = pmov %p2432_p1 }
  0x34   : > { %p275_p5 = scmp.lt.s32.totalorder %s2021_s25, 3  ;;  %vm321_vm0 = vcmask 261120   ;;  %v317_v0 = vld [vmem:[#allocation2] sm:$0xff]  ;;  %v318_v1 = vld [vmem:[#allocation2 + $0x8] sm:$0xff]  ;;  %v319_v2 = vld [vmem:[#allocation2 + $0x10] sm:$0xff]  ;;  %s1308_s11 = sshll.u32 %s2021_s25, 11 }
  0x35   : > { %1938 = vsyncadd (%p2433_p0), [#allocation3], 4294966784  ;;  %v1625_v3 = vpack.c.bf16 %v318_v1, %v317_v0  ;;  %v320_v4 = vld [vmem:[#allocation2 + $0x18] sm:$0xff]  ;;  %v683_v23 = vld [vmem:[%s2421_s4] sm:$0xff]  ;;  %s2368_s18 = scalar_lea.hbm %s2423_s6, %s1308_s11  ;;  %p2434_p9 = scmp.ne.s32.totalorder %s2427_s7, 0 }
  0x36   : > { %s2085_s13 = scalar_select %p275_p5, %s2021_s25, 3  ;;  %v1629_v6 = vpack.c.bf16 %v320_v4, %v319_v2  ;;  %v684_v24 = vld [vmem:[%s2421_s4 + $0x8] sm:$0xff]  ;;  %v685_v25 = vld [vmem:[%s2421_s4 + $0x10] sm:$0xff]  ;;  %v686_v27 = vld [vmem:[%s2421_s4 + $0x18] sm:$0xff] }
  0x37   : > { %1626 = vmatprep.subr.bf16.mxu0 %v1625_v3  ;;  %v1665_v26 = vpack.c.bf16 %v684_v24, %v683_v23  ;;  %v1669_v28 = vpack.c.bf16 %v686_v27, %v685_v25  ;;  %v687_v29 = vld [vmem:[%s2421_s4 + $0x20] sm:$0xff]  ;;  %v688_v30 = vld [vmem:[%s2421_s4 + $0x28] sm:$0xff]  ;;  %v689_v32 = vld [vmem:[%s2421_s4 + $0x30] sm:$0xff]  ;;  %s1962_s20 = smov [#allocation5]  }
  0x38   : > { %s1306_s12 = sshll.u32 %s2085_s13, 7  ;;  %1628 = vmatpush3.bf16.msra.mxu0 %v1625_v3  ;;  %v1673_v31 = vpack.c.bf16 %v688_v30, %v687_v29  ;;  %v690_v33 = vld [vmem:[%s2421_s4 + $0x38] sm:$0xff]  ;;  %v691_v35 = vld [vmem:[%s2421_s4 + $0x40] sm:$0xff]  ;;  %v692_v36 = vld [vmem:[%s2421_s4 + $0x48] sm:$0xff]  ;;  %s272_s13 = sand.u32 1, %s1949_s22  }
  0x39   : > { %s2093_s9 = scalar_lea.vmem %s2417_s0, %s1306_s12  ;;  %1630 = vmatprep.subr.bf16.mxu0 %v1629_v6  ;;  %s2132_s17 = scalar_lea.vmem %s2418_s1, %s1306_s12  ;;  %v1677_v34 = vpack.c.bf16 %v690_v33, %v689_v32  ;;  %v1681_v37 = vpack.c.bf16 %v692_v36, %v691_v35  ;;  %v693_v38 = vld [vmem:[%s2421_s4 + $0x50] sm:$0xff]  ;;  %v694_v39 = vld [vmem:[%s2421_s4 + $0x58] sm:$0xff]  ;;  %v695_v41 = vld [vmem:[%s2421_s4 + $0x60] sm:$0xff] }
  0x3a   : > { %v285_v5 = vld [vmem:[%s2093_s9] sm:$0xff]  ;;  %v286_v7 = vld [vmem:[%s2093_s9 + $0x8] sm:$0xff]  ;;  %v287_v8 = vld [vmem:[%s2093_s9 + $0x10] sm:$0xff]  ;;  %v1685_v40 = vpack.c.bf16 %v694_v39, %v693_v38  ;;  %s1278_s12 = sshll.u32 %s272_s13, 7  ;;  %s2376_s25 = scalar_lea.sflag [#allocation4], %s272_s13 }
  0x3b   : > { %1433 = vmatprep.mubr.msk.f32.mxu0 %vm321_vm0, %v285_v5  ;;  %v288_v9 = vld [vmem:[%s2093_s9 + $0x18] sm:$0xff]  ;;  %v289_v10 = vld [vmem:[%s2093_s9 + $0x20] sm:$0xff]  ;;  %v290_v11 = vld [vmem:[%s2093_s9 + $0x28] sm:$0xff]  ;;  %s2332_s14 = scalar_lea.vmem [#allocation5], %s1278_s12  ;;  %s1895_s26 = sshll.u32 %s1962_s20, 4  ;;  %s1896_s26 = int_to_ptr.vmem [resolvable:$false] %s1895_s26 }
  0x3c   : > { %1632 = vmatpush3.bf16.msra.mxu0 %v1629_v6  ;;  %v291_v12 = vld [vmem:[%s2093_s9 + $0x30] sm:$0xff]  ;;  %v292_v13 = vld [vmem:[%s2093_s9 + $0x38] sm:$0xff]  ;;  %v293_v14 = vld [vmem:[%s2093_s9 + $0x40] sm:$0xff]  ;;  %s1897_s28 = scalar_lea.vmem %s1896_s26, 4096 }
  0x3d   : > { %v294_v15 = vld [vmem:[%s2093_s9 + $0x48] sm:$0xff]  ;;  %v295_v16 = vld [vmem:[%s2093_s9 + $0x50] sm:$0xff]  ;;  %v296_v17 = vld [vmem:[%s2093_s9 + $0x58] sm:$0xff]  ;;  %1666 = vmatprep.subr.bf16.mxu0 %v1665_v26 }
  0x3e   : > { %v297_v18 = vld [vmem:[%s2093_s9 + $0x60] sm:$0xff]  ;;  %v298_v19 = vld [vmem:[%s2093_s9 + $0x68] sm:$0xff]  ;;  %v299_v20 = vld [vmem:[%s2093_s9 + $0x70] sm:$0xff] }
  0x3f   : > { %1434 = vmatmul.mubr.msk.f32.vlgmr.msra.gmra.mrb[0].mxu0 %vm321_vm0, %v286_v7  ;;  %v300_v21 = vld [vmem:[%s2093_s9 + $0x78] sm:$0xff]  ;;  %v2135_v22 = vld [vmem:[%s2132_s17] sm:$0xff]  ;;  %v696_v42 = vld [vmem:[%s2421_s4 + $0x68] sm:$0xff]  ;;  %s1186_s9 = sshll.u32 %s2332_s14, 4  ;;  %s2370_s9 = int_to_ptr.vmem [resolvable:$true] %s1186_s9 }
  0x40   : > { %1436 = vmatprep.mubr.msk.f32.mxu0 %vm321_vm0, %v287_v8  ;;  %1489 = vmatprep.mubr.f32.mxu1 %v2135_v22  ;;  %v1689_v43 = vpack.c.bf16 %v696_v42, %v695_v41  ;;  %v2181_v4 = vld [vmem:[%s2132_s17 + $0x8] sm:$0xff]  ;;  %v2184_v5 = vld [vmem:[%s2132_s17 + $0x10] sm:$0xff]  ;;  %v2189_v6 = vld [vmem:[%s2132_s17 + $0x18] sm:$0xff]  ;;  %s1891_s19 = scalar_lea.vmem %s2370_s9, 2048  ;;  %p1898_p2 = scmp.lt.s32.totalorder %s2370_s9, %s1896_s26 }
  0x41   : > { %1668 = vmatpush3.bf16.msra.mxu0 %v1665_v26  ;;  %v2192_v7 = vld [vmem:[%s2132_s17 + $0x20] sm:$0xff]  ;;  %v2197_v8 = vld [vmem:[%s2132_s17 + $0x28] sm:$0xff]  ;;  %p1892_p6 = scmp.ne.s32.totalorder %s2370_s9, %s1891_s19  ;;  %p1899_p3 = scmp.lt.s32.totalorder %s1897_s28, %s1891_s19 }
  0x42   : > { %1670 = vmatprep.subr.bf16.mxu0 %v1669_v28  ;;  %v1299_v23 = vld [vmem:[%s2420_s3] ss:$0 sm:$0xff] }
  0x43   : > { %1437 = vmatmul.mubr.msk.f32.gmra.mrb[2].mxu0 %vm321_vm0, %v288_v9  ;;  %v307_v9 = vld [vmem:[%s2132_s17 + $0x30] sm:$0xff]  ;;  %p1893_p10 = pnand %p1892_p6, %p2434_p9  ;;  %p1900_p4 = por %p1899_p3, %p1898_p2 }
  0x44   : > { %1439 = vmatprep.mubr.msk.f32.mxu0 %vm321_vm0, %v289_v10  ;;  %v2202_v10 = vld [vmem:[%s2132_s17 + $0x38] sm:$0xff] }
  0x45   : > { %1672 = vmatpush3.bf16.msra.mxu0 %v1669_v28  ;;  %p1894_p12 = pneg %p1893_p10 }
  0x46   : > { %1674 = vmatprep.subr.bf16.mxu0 %v1673_v31 }
  0x47   : > { %1440 = vmatmul.mubr.msk.f32.gmra.mrb[4].mxu0 %vm321_vm0, %v290_v11  ;;  %v2205_v11 = vld [vmem:[%s2132_s17 + $0x40] sm:$0xff]  ;;  %p1901_p7 = pnand %p1900_p4, %p1894_p12 }
  0x48   : > { %1442 = vmatprep.mubr.msk.f32.mxu0 %vm321_vm0, %v291_v12  ;;  %v2210_v12 = vld [vmem:[%s2132_s17 + $0x48] sm:$0xff] }
  0x49   : > { %1676 = vmatpush3.bf16.msra.mxu0 %v1673_v31 }
  0x4a   : > { %1678 = vmatprep.subr.bf16.mxu0 %v1677_v34 }
  0x4b   : > { %1443 = vmatmul.mubr.msk.f32.gmra.mrb[6].mxu0 %vm321_vm0, %v292_v13  ;;  %v2213_v13 = vld [vmem:[%s2132_s17 + $0x50] sm:$0xff] }
  0x4c   : > { %1445 = vmatprep.mubr.msk.f32.mxu0 %vm321_vm0, %v293_v14  ;;  %v2218_v14 = vld [vmem:[%s2132_s17 + $0x58] sm:$0xff] }
  0x4d   : > { %1680 = vmatpush3.bf16.msra.mxu0 %v1677_v34 }
  0x4e   : > { %1682 = vmatprep.subr.bf16.mxu0 %v1681_v37 }
  0x4f   : > { %1446 = vmatmul.mubr.msk.f32.gmra.mrb[8].mxu0 %vm321_vm0, %v294_v15  ;;  %v2221_v15 = vld [vmem:[%s2132_s17 + $0x60] sm:$0xff] }
  0x50   : > { %1448 = vmatprep.mubr.msk.f32.mxu0 %vm321_vm0, %v295_v16  ;;  %v2226_v16 = vld [vmem:[%s2132_s17 + $0x68] sm:$0xff] }
  0x51   : > { %1684 = vmatpush3.bf16.msra.mxu0 %v1681_v37 }
  0x52   : > { %1686 = vmatprep.subr.bf16.mxu0 %v1685_v40 }
  0x53   : > { %1449 = vmatmul.mubr.msk.f32.gmra.mrb[10].mxu0 %vm321_vm0, %v296_v17  ;;  %v2229_v17 = vld [vmem:[%s2132_s17 + $0x70] sm:$0xff] }
  0x54   : > { %1451 = vmatprep.mubr.msk.f32.mxu0 %vm321_vm0, %v297_v18  ;;  %v2234_v18 = vld [vmem:[%s2132_s17 + $0x78] sm:$0xff] }
  0x55   : > { %1688 = vmatpush3.bf16.msra.mxu0 %v1685_v40 }
  0x56   : > { %1690 = vmatprep.subr.bf16.mxu0 %v1689_v43 }
  0x57   : > { %1452 = vmatmul.mubr.msk.f32.gmra.mrb[12].mxu0 %vm321_vm0, %v298_v19  ;;  %v697_v19 = vld [vmem:[%s2421_s4 + $0x70] sm:$0xff] }
  0x58   : > { %1454 = vmatprep.mubr.msk.f32.mxu0 %vm321_vm0, %v299_v20  ;;  %v698_v20 = vld [vmem:[%s2421_s4 + $0x78] sm:$0xff] }
  0x59   : > { %1692 = vmatpush3.bf16.msra.mxu0 %v1689_v43 }
  0x5b   : > { %1455 = vmatmul.mubr.msk.f32.gmra.mrb[14].mxu0 %vm321_vm0, %v300_v21  ;;  %v1693_v21 = vpack.c.bf16 %v698_v20, %v697_v19 }
  0x5d   : > { %1694 = vmatprep.subr.bf16.mxu0 %v1693_v21 }
  0x5e   : > { %1696 = vmatpush3.bf16.msra.mxu0 %v1693_v21 }
 0x112   : > { %v1435_v44 = vpop.f32.mrb[0].mxu0 }
 0x113   : > { %v436_v45 = vpop.f32.mrb[1].mxu0 }
 0x114   : > { %v1633_v46 = vpack.c.bf16 %v1435_v44, %v436_v45 }
 0x116   : > { %v1438_v47 = vpop.f32.mrb[2].mxu0  ;;  %1634 = vmatprep.subr.bf16.mxu1 %v1633_v46 }
 0x117   : > { %v446_v48 = vpop.f32.mrb[3].mxu0  ;;  %1636 = vmatpush3.bf16.msra.mxu1 %v1633_v46 }
 0x118   : > { %v1637_v49 = vpack.c.bf16 %v1438_v47, %v446_v48 }
 0x11a   : > { %v1441_v50 = vpop.f32.mrb[4].mxu0  ;;  %1638 = vmatprep.subr.bf16.mxu1 %v1637_v49 }
 0x11b   : > { %v456_v51 = vpop.f32.mrb[5].mxu0  ;;  %1640 = vmatpush3.bf16.msra.mxu1 %v1637_v49 }
 0x11c   : > { %v1641_v52 = vpack.c.bf16 %v1441_v50, %v456_v51 }
 0x11e   : > { %v1444_v53 = vpop.f32.mrb[6].mxu0  ;;  %1642 = vmatprep.subr.bf16.mxu1 %v1641_v52 }
 0x11f   : > { %v466_v54 = vpop.f32.mrb[7].mxu0  ;;  %1644 = vmatpush3.bf16.msra.mxu1 %v1641_v52 }
 0x120   : > { %v1645_v55 = vpack.c.bf16 %v1444_v53, %v466_v54 }
 0x122   : > { %v1447_v56 = vpop.f32.mrb[8].mxu0  ;;  %1646 = vmatprep.subr.bf16.mxu1 %v1645_v55 }
 0x123   : > { %v476_v57 = vpop.f32.mrb[9].mxu0  ;;  %1648 = vmatpush3.bf16.msra.mxu1 %v1645_v55 }
 0x124   : > { %v1649_v58 = vpack.c.bf16 %v1447_v56, %v476_v57 }
 0x126   : > { %v1450_v59 = vpop.f32.mrb[10].mxu0  ;;  %1650 = vmatprep.subr.bf16.mxu1 %v1649_v58 }
 0x127   : > { %v486_v60 = vpop.f32.mrb[11].mxu0  ;;  %1652 = vmatpush3.bf16.msra.mxu1 %v1649_v58 }
 0x128   : > { %v1653_v61 = vpack.c.bf16 %v1450_v59, %v486_v60 }
 0x12a   : > { %v1453_v62 = vpop.f32.mrb[12].mxu0  ;;  %1654 = vmatprep.subr.bf16.mxu1 %v1653_v61 }
 0x12b   : > { %v496_v63 = vpop.f32.mrb[13].mxu0  ;;  %1656 = vmatpush3.bf16.msra.mxu1 %v1653_v61 }
 0x12c   : > { %v1657_v0 = vpack.c.bf16 %v1453_v62, %v496_v63 }
 0x12e   : > { %v1456_v1 = vpop.f32.mrb[14].mxu0  ;;  %1658 = vmatprep.subr.bf16.mxu1 %v1657_v0 }
 0x12f   : > { %v506_v2 = vpop.f32.mrb[15].mxu0  ;;  %1660 = vmatpush3.bf16.msra.mxu1 %v1657_v0 }
 0x130   : > { %v1661_v3 = vpack.c.bf16 %v1456_v1, %v506_v2 }
 0x132   : > { %1662 = vmatprep.subr.bf16.mxu1 %v1661_v3 }
 0x133   : > { %1664 = vmatpush3.bf16.msra.mxu1 %v1661_v3 }
 0x136   : > { %1490 = vmatmul.mubr.f32.vlgmr.msra.gmra.mrb[0].mxu1 %v2181_v4 }
 0x137   : > { %1492 = vmatprep.mubr.f32.mxu1 %v2184_v5 }
 0x13a   : > { %1493 = vmatmul.mubr.f32.gmra.mrb[2].mxu1 %v2189_v6 }
 0x13b   : > { %1495 = vmatprep.mubr.f32.mxu1 %v2192_v7 }
 0x13e   : > { %1496 = vmatmul.mubr.f32.gmra.mrb[4].mxu1 %v2197_v8 }
 0x13f   : > { %1498 = vmatprep.mubr.f32.mxu1 %v307_v9 }
 0x142   : > { %1499 = vmatmul.mubr.f32.gmra.mrb[6].mxu1 %v2202_v10 }
 0x143   : > { %1501 = vmatprep.mubr.f32.mxu1 %v2205_v11 }
 0x146   : > { %1502 = vmatmul.mubr.f32.gmra.mrb[8].mxu1 %v2210_v12 }
 0x147   : > { %1504 = vmatprep.mubr.f32.mxu1 %v2213_v13 }
 0x14a   : > { %1505 = vmatmul.mubr.f32.gmra.mrb[10].mxu1 %v2218_v14 }
 0x14b   : > { %1507 = vmatprep.mubr.f32.mxu1 %v2221_v15 }
 0x14e   : > { %1508 = vmatmul.mubr.f32.gmra.mrb[12].mxu1 %v2226_v16 }
 0x14f   : > { %1510 = vmatprep.mubr.f32.mxu1 %v2229_v17 }
 0x152   : > { %1511 = vmatmul.mubr.f32.gmra.mrb[14].mxu1 %v2234_v18 }
 0x153   : > { %1610 = vmatprep.mubr.f32.mxu1 %v307_v9 }
 0x209   : > { %v1491_v24 = vpop.f32.mrb[0].mxu1 }
 0x20a   : > { %v594_v25 = vadd.f32 %v1491_v24, %v1299_v23  ;;  %v588_v26 = vpop.f32.mrb[1].mxu1 }
 0x20b   : > { %v589_v27 = vadd.f32 %v1299_v23, %v588_v26 }
 0x20c   : > { %v668_v30 = vmax.f32 %v594_v25, 0.0 }
 0x20d   : > { %v667_v28 = vmax.f32 %v589_v27, 0.0  ;;  %v1494_v29 = vpop.f32.mrb[2].mxu1 }
 0x20e   : > { %v604_v31 = vadd.f32 %v1494_v29, %v1299_v23  ;;  %v598_v32 = vpop.f32.mrb[3].mxu1 }
 0x20f   : > { %v599_v33 = vadd.f32 %v1299_v23, %v598_v32  ;;  %1545 = vmatprep.mubr.f32.mxu0 %v667_v28 }
 0x210   : > { %1546 = vmatmul.mubr.f32.vlgmr.msra.gmra.mrb[16].mxu0 %v668_v30  ;;  %v670_v36 = vmax.f32 %v604_v31, 0.0 }
 0x211   : > { %v669_v34 = vmax.f32 %v599_v33, 0.0  ;;  %v1497_v35 = vpop.f32.mrb[4].mxu1 }
 0x212   : > { %v614_v37 = vadd.f32 %v1497_v35, %v1299_v23  ;;  %v608_v38 = vpop.f32.mrb[5].mxu1 }
 0x213   : > { %v609_v39 = vadd.f32 %v1299_v23, %v608_v38  ;;  %1548 = vmatprep.mubr.f32.mxu0 %v669_v34 }
 0x214   : > { %1549 = vmatmul.mubr.f32.gmra.mrb[18].mxu0 %v670_v36  ;;  %v672_v42 = vmax.f32 %v614_v37, 0.0 }
 0x215   : > { %v671_v40 = vmax.f32 %v609_v39, 0.0  ;;  %v1500_v41 = vpop.f32.mrb[6].mxu1 }
 0x216   : > { %v624_v43 = vadd.f32 %v1500_v41, %v1299_v23  ;;  %v618_v44 = vpop.f32.mrb[7].mxu1 }
 0x217   : > { %v619_v45 = vadd.f32 %v1299_v23, %v618_v44  ;;  %1551 = vmatprep.mubr.f32.mxu0 %v671_v40 }
 0x218   : > { %1552 = vmatmul.mubr.f32.gmra.mrb[20].mxu0 %v672_v42  ;;  %v674_v48 = vmax.f32 %v624_v43, 0.0 }
 0x219   : > { %v673_v46 = vmax.f32 %v619_v45, 0.0  ;;  %v1503_v47 = vpop.f32.mrb[8].mxu1 }
 0x21a   : > { %v634_v49 = vadd.f32 %v1503_v47, %v1299_v23  ;;  %v628_v50 = vpop.f32.mrb[9].mxu1 }
 0x21b   : > { %v629_v51 = vadd.f32 %v1299_v23, %v628_v50  ;;  %1554 = vmatprep.mubr.f32.mxu0 %v673_v46 }
 0x21c   : > { %1555 = vmatmul.mubr.f32.gmra.mrb[22].mxu0 %v674_v48  ;;  %v676_v54 = vmax.f32 %v634_v49, 0.0 }
 0x21d   : > { %v675_v52 = vmax.f32 %v629_v51, 0.0  ;;  %v1506_v53 = vpop.f32.mrb[10].mxu1 }
 0x21e   : > { %v644_v55 = vadd.f32 %v1506_v53, %v1299_v23  ;;  %v638_v56 = vpop.f32.mrb[11].mxu1 }
 0x21f   : > { %v639_v57 = vadd.f32 %v1299_v23, %v638_v56  ;;  %1557 = vmatprep.mubr.f32.mxu0 %v675_v52 }
 0x220   : > { %1558 = vmatmul.mubr.f32.gmra.mrb[24].mxu0 %v676_v54  ;;  %v678_v60 = vmax.f32 %v644_v55, 0.0 }
 0x221   : > { %v677_v58 = vmax.f32 %v639_v57, 0.0  ;;  %v1509_v59 = vpop.f32.mrb[12].mxu1 }
 0x222   : > { %v654_v61 = vadd.f32 %v1509_v59, %v1299_v23  ;;  %v648_v62 = vpop.f32.mrb[13].mxu1 }
 0x223   : > { %v649_v63 = vadd.f32 %v1299_v23, %v648_v62  ;;  %1560 = vmatprep.mubr.f32.mxu0 %v677_v58 }
 0x224   : > { %1561 = vmatmul.mubr.f32.gmra.mrb[26].mxu0 %v678_v60  ;;  %v680_v2 = vmax.f32 %v654_v61, 0.0 }
 0x225   : > { %v679_v0 = vmax.f32 %v649_v63, 0.0  ;;  %v1512_v1 = vpop.f32.mrb[14].mxu1 }
 0x226   : > { %v664_v3 = vadd.f32 %v1512_v1, %v1299_v23  ;;  %v658_v9 = vpop.f32.mrb[15].mxu1 }
 0x227   : > { %v659_v19 = vadd.f32 %v1299_v23, %v658_v9  ;;  %1563 = vmatprep.mubr.f32.mxu0 %v679_v0 }
 0x228   : > { %1564 = vmatmul.mubr.f32.gmra.mrb[28].mxu0 %v680_v2  ;;  %v682_v21 = vmax.f32 %v664_v3, 0.0 }
 0x229   : > { %v681_v20 = vmax.f32 %v659_v19, 0.0 }
 0x22b   : > { %1566 = vmatprep.mubr.f32.mxu0 %v681_v20 }
 0x22c   : > { %1567 = vmatmul.mubr.f32.gmra.mrb[30].mxu0 %v682_v21 }
 0x22d   : > { %1601 = vmatprep.mubr.f32.mxu0 %v2135_v22 }
 0x2e3   : > { %v1547_v24 = vpop.f32.mrb[16].mxu0 }
 0x2e4   : > { %v765_v25 = vpop.f32.mrb[17].mxu0 }
 0x2e5   : > { %v1697_v26 = vpack.c.bf16 %v1547_v24, %v765_v25 }
 0x2e7   : > { %v1550_v27 = vpop.f32.mrb[18].mxu0  ;;  %1698 = vmatprep.subr.bf16.mxu0 %v1697_v26  ;;  %1729 = vmatprep.subr.bf16.mxu1 %v1697_v26 }
 0x2e8   : > { %v775_v28 = vpop.f32.mrb[19].mxu0  ;;  %1700 = vmatpush3.bf16.msra.mxu0 %v1697_v26  ;;  %1737 = vmatpush3.bf16.msra.mxu1 %v1697_v26 }
 0x2e9   : > { %v1701_v29 = vpack.c.bf16 %v1550_v27, %v775_v28 }
 0x2eb   : > { %v1553_v30 = vpop.f32.mrb[20].mxu0  ;;  %1702 = vmatprep.subr.bf16.mxu0 %v1701_v29  ;;  %1730 = vmatprep.subr.bf16.mxu1 %v1701_v29 }
 0x2ec   : > { %v785_v23 = vpop.f32.mrb[21].mxu0  ;;  %1704 = vmatpush3.bf16.msra.mxu0 %v1701_v29  ;;  %1738 = vmatpush3.bf16.msra.mxu1 %v1701_v29 }
 0x2ed   : > { %v1705_v31 = vpack.c.bf16 %v1553_v30, %v785_v23 }
 0x2ef   : > { %v1556_v32 = vpop.f32.mrb[22].mxu0  ;;  %1706 = vmatprep.subr.bf16.mxu0 %v1705_v31  ;;  %1731 = vmatprep.subr.bf16.mxu1 %v1705_v31 }
 0x2f0   : > { %v795_v22 = vpop.f32.mrb[23].mxu0  ;;  %1708 = vmatpush3.bf16.msra.mxu0 %v1705_v31  ;;  %1739 = vmatpush3.bf16.msra.mxu1 %v1705_v31 }
 0x2f1   : > { %v1709_v33 = vpack.c.bf16 %v1556_v32, %v795_v22 }
 0x2f3   : > { %v1559_v34 = vpop.f32.mrb[24].mxu0  ;;  %1710 = vmatprep.subr.bf16.mxu0 %v1709_v33  ;;  %1732 = vmatprep.subr.bf16.mxu1 %v1709_v33 }
 0x2f4   : > { %v805_v35 = vpop.f32.mrb[25].mxu0  ;;  %1712 = vmatpush3.bf16.msra.mxu0 %v1709_v33  ;;  %1740 = vmatpush3.bf16.msra.mxu1 %v1709_v33 }
 0x2f5   : > { %v1713_v36 = vpack.c.bf16 %v1559_v34, %v805_v35 }
 0x2f7   : > { %v1562_v37 = vpop.f32.mrb[26].mxu0  ;;  %1714 = vmatprep.subr.bf16.mxu0 %v1713_v36  ;;  %1733 = vmatprep.subr.bf16.mxu1 %v1713_v36 }
 0x2f8   : > { %v815_v38 = vpop.f32.mrb[27].mxu0  ;;  %1716 = vmatpush3.bf16.msra.mxu0 %v1713_v36  ;;  %1741 = vmatpush3.bf16.msra.mxu1 %v1713_v36 }
 0x2f9   : > { %v1717_v39 = vpack.c.bf16 %v1562_v37, %v815_v38 }
 0x2fb   : > { %v1565_v40 = vpop.f32.mrb[28].mxu0  ;;  %1718 = vmatprep.subr.bf16.mxu0 %v1717_v39  ;;  %1734 = vmatprep.subr.bf16.mxu1 %v1717_v39 }
 0x2fc   : > { %v825_v41 = vpop.f32.mrb[29].mxu0  ;;  %1720 = vmatpush3.bf16.msra.mxu0 %v1717_v39  ;;  %1742 = vmatpush3.bf16.msra.mxu1 %v1717_v39 }
 0x2fd   : > { %v1721_v42 = vpack.c.bf16 %v1565_v40, %v825_v41 }
 0x2ff   : > { %v1568_v43 = vpop.f32.mrb[30].mxu0  ;;  %1722 = vmatprep.subr.bf16.mxu0 %v1721_v42  ;;  %1735 = vmatprep.subr.bf16.mxu1 %v1721_v42 }
 0x300   : > { %v835_v44 = vpop.f32.mrb[31].mxu0  ;;  %1724 = vmatpush3.bf16.msra.mxu0 %v1721_v42  ;;  %1743 = vmatpush3.bf16.msra.mxu1 %v1721_v42 }
 0x301   : > { %v1725_v45 = vpack.c.bf16 %v1568_v43, %v835_v44 }
 0x303   : > { %1726 = vmatprep.subr.bf16.mxu0 %v1725_v45  ;;  %1736 = vmatprep.subr.bf16.mxu1 %v1725_v45 }
 0x304   : > { %1728 = vmatpush3.bf16.msra.mxu0 %v1725_v45  ;;  %1744 = vmatpush3.bf16.msra.mxu1 %v1725_v45 }
 0x307   : > { %1602 = vmatmul.mubr.f32.vlgmr.msra.gmra.mrb[32].mxu0 %v2181_v4  ;;  %1611 = vmatmul.mubr.f32.vlgmr.msra.gmra.mrb[16].mxu1 %v2202_v10  ;;  %v1300_v4 = vld [vmem:[%s2422_s5] ss:$0 sm:$0xff] }
 0x308   : > { %1604 = vmatprep.mubr.f32.mxu0 %v2184_v5  ;;  %1613 = vmatprep.mubr.f32.mxu1 %v2205_v11 }
 0x30b   : > { %1605 = vmatmul.mubr.f32.gmra.mrb[34].mxu0 %v2189_v6  ;;  %1614 = vmatmul.mubr.f32.gmra.mrb[18].mxu1 %v2210_v12 }
 0x30c   : > { %1607 = vmatprep.mubr.f32.mxu0 %v2192_v7  ;;  %1616 = vmatprep.mubr.f32.mxu1 %v2213_v13 }
 0x30f   : > { %1608 = vmatmul.mubr.f32.gmra.mrb[36].mxu0 %v2197_v8  ;;  %1617 = vmatmul.mubr.f32.gmra.mrb[20].mxu1 %v2218_v14 }
 0x310   : > { %1619 = vmatprep.mubr.f32.mxu1 %v2221_v15 }
 0x313   : > { %1620 = vmatmul.mubr.f32.gmra.mrb[22].mxu1 %v2226_v16 }
 0x314   : > { %1622 = vmatprep.mubr.f32.mxu1 %v2229_v17 }
 0x317   : > { %1623 = vmatmul.mubr.f32.gmra.mrb[24].mxu1 %v2234_v18 }
 0x3da   : > { %v1603_v5 = vpop.f32.mrb[32].mxu0  ;;  %v1612_v6 = vpop.f32.mrb[16].mxu1 }
 0x3db   : > { %v923_v7 = vadd.f32 %v1603_v5, %v1300_v4  ;;  %v953_v10 = vadd.f32 %v1612_v6, %v1300_v4  ;;  %v917_v11 = vpop.f32.mrb[33].mxu0  ;;  %v947_v8 = vpop.f32.mrb[17].mxu1 }
 0x3dc   : > { %v918_v14 = vadd.f32 %v1300_v4, %v917_v11  ;;  %v948_v48 = vadd.f32 %v1300_v4, %v947_v8 }
 0x3dd   : > { %1010 = vmax.xlane.f32.xlu1 %v953_v10  ;;  %998 = vmax.xlane.f32.xlu0 %v923_v7 }
 0x3de   : > { %v1606_v12 = vpop.f32.mrb[34].mxu0  ;;  %v1615_v13 = vpop.f32.mrb[18].mxu1 }
 0x3df   : > { %v933_v15 = vadd.f32 %v1606_v12, %v1300_v4  ;;  %v927_v16 = vpop.f32.mrb[35].mxu0  ;;  %v957_v17 = vpop.f32.mrb[19].mxu1  ;;  %v963_v18 = vadd.f32 %v1615_v13, %v1300_v4 }
 0x3e0   : > { %v928_v52 = vadd.f32 %v1300_v4, %v927_v16  ;;  %v958_v53 = vadd.f32 %v1300_v4, %v957_v17 }
 0x3e1   : > { %1002 = vmax.xlane.f32.xlu1 %v933_v15  ;;  %996 = vmax.xlane.f32.xlu0 %v918_v14 }
 0x3e2   : > { %v1609_v46 = vpop.f32.mrb[36].mxu0  ;;  %v1618_v47 = vpop.f32.mrb[20].mxu1 }
 0x3e3   : > { %v937_v49 = vpop.f32.mrb[37].mxu0  ;;  %v967_v50 = vpop.f32.mrb[21].mxu1  ;;  %v943_v55 = vadd.f32 %v1609_v46, %v1300_v4  ;;  %v973_v59 = vadd.f32 %v1618_v47, %v1300_v4 }
 0x3e4   : > { %v938_v56 = vadd.f32 %v1300_v4, %v937_v49  ;;  %v968_v60 = vadd.f32 %v1300_v4, %v967_v50 }
 0x3e5   : > { %1014 = vmax.xlane.f32.xlu1 %v963_v18  ;;  %1008 = vmax.xlane.f32.xlu0 %v948_v48 }
 0x3e6   : > { %v1621_v51 = vpop.f32.mrb[22].mxu1 }
 0x3e7   : > { %v977_v54 = vpop.f32.mrb[23].mxu1  ;;  %v2264_v61 = vadd.f32 %v1621_v51, %v1300_v4 }
 0x3e8   : > { %v2266_v62 = vadd.f32 %v1300_v4, %v977_v54 }
 0x3e9   : > { %1000 = vmax.xlane.f32.xlu1 %v928_v52  ;;  %1012 = vmax.xlane.f32.xlu0 %v958_v53 }
 0x3ea   : > { %v1624_v57 = vpop.f32.mrb[24].mxu1 }
 0x3eb   : > { %v987_v58 = vpop.f32.mrb[25].mxu1  ;;  %v2268_v63 = vadd.f32 %v1624_v57, %v1300_v4 }
 0x3ec   : > { %v2272_v0 = vadd.f32 %v1300_v4, %v987_v58 }
 0x3ed   : > { %1006 = vmax.xlane.f32.xlu1 %v943_v55  ;;  %1004 = vmax.xlane.f32.xlu0 %v938_v56 }
 0x3f1   : > { %1018 = vmax.xlane.f32.xlu1 %v973_v59  ;;  %1016 = vmax.xlane.f32.xlu0 %v968_v60 }
 0x3f5   : > { %1022 = vmax.xlane.f32.xlu1 %v2264_v61  ;;  %1020 = vmax.xlane.f32.xlu0 %v2266_v62 }
 0x3f9   : > { %1026 = vmax.xlane.f32.xlu1 %v2268_v63  ;;  %1024 = vmax.xlane.f32.xlu0 %v2272_v0 }
 0x46a   : > { %v1011_v1 = vpop.xlane.xlu1 %1010  ;;  %v999_v2 = vpop.xlane.xlu0 %998 }
 0x46b   : > { %v2276_v3 = vsub.f32 %v953_v10, %v1011_v1  ;;  %v2278_v9 = vsub.f32 %v923_v7, %v999_v2 }
 0x46d   : > { %v1046_v19 = vmul.f32 1.442695, %v2278_v9  ;;  %v1058_v24 = vmul.f32 1.442695, %v2276_v3 }
 0x46e   : > { %v1003_v20 = vpop.xlane.xlu1 %1002  ;;  %v997_v21 = vpop.xlane.xlu0 %996 }
 0x46f   : > { %v2282_v25 = vsub.f32 %v933_v15, %v1003_v20  ;;  %v2284_v26 = vsub.f32 %v918_v14, %v997_v21  ;;  %1799 = vpow2.f32 %v1046_v19 }
 0x470   : > { %1801 = vpow2.f32 %v1058_v24 }
 0x471   : > { %v1044_v27 = vmul.f32 1.442695, %v2284_v26  ;;  %v1050_v30 = vmul.f32 1.442695, %v2282_v25 }
 0x472   : > { %v1015_v28 = vpop.xlane.xlu1 %1014  ;;  %v1009_v29 = vpop.xlane.xlu0 %1008 }
 0x473   : > { %v2288_v23 = vsub.f32 %v948_v48, %v1009_v29  ;;  %1803 = vpow2.f32 %v1044_v27  ;;  %v2290_v31 = vsub.f32 %v963_v18, %v1015_v28 }
 0x474   : > { %1805 = vpow2.f32 %v1050_v30 }
 0x475   : > { %v1056_v32 = vmul.f32 1.442695, %v2288_v23  ;;  %v1062_v35 = vmul.f32 1.442695, %v2290_v31 }
 0x476   : > { %v1001_v22 = vpop.xlane.xlu1 %1000  ;;  %v1013_v33 = vpop.xlane.xlu0 %1012 }
 0x477   : > { %v2293_v34 = vsub.f32 %v928_v52, %v1001_v22  ;;  %1807 = vpow2.f32 %v1056_v32  ;;  %v2296_v36 = vsub.f32 %v958_v53, %v1013_v33 }
 0x479   : > { %v1048_v37 = vmul.f32 1.442695, %v2293_v34  ;;  %v1800_v38 = vpop.eup %1799  ;;  %v1060_v42 = vmul.f32 1.442695, %v2296_v36 }
 0x47a   : > { %v1007_v39 = vpop.xlane.xlu1 %1006  ;;  %v1005_v40 = vpop.xlane.xlu0 %1004  ;;  %1078 = vadd.xlane.f32.xlu1 %v1800_v38 }
 0x47b   : > { %1809 = vpow2.f32 %v1048_v37  ;;  %v2299_v41 = vsub.f32 %v943_v55, %v1007_v39  ;;  %v2302_v43 = vsub.f32 %v938_v56, %v1005_v40  ;;  %v1802_v44 = vpop.eup %1801 }
 0x47c   : > { %1811 = vpow2.f32 %v1062_v35 }
 0x47d   : > { %v1054_v45 = vmul.f32 1.442695, %v2299_v41  ;;  %v1804_v4 = vpop.eup %1803  ;;  %v1052_v10 = vmul.f32 1.442695, %v2302_v43 }
 0x47e   : > { %v1019_v5 = vpop.xlane.xlu1 %1018  ;;  %v1017_v6 = vpop.xlane.xlu0 %1016  ;;  %1090 = vadd.xlane.f32.xlu1 %v1802_v44  ;;  %1076 = vadd.xlane.f32.xlu0 %v1804_v4 }
 0x47f   : > { %1813 = vpow2.f32 %v1054_v45  ;;  %v2305_v7 = vsub.f32 %v973_v59, %v1019_v5  ;;  %v2308_v11 = vsub.f32 %v968_v60, %v1017_v6  ;;  %v1806_v8 = vpop.eup %1805 }
 0x480   : > { %1815 = vpow2.f32 %v1060_v42 }
 0x481   : > { %v1066_v12 = vmul.f32 1.442695, %v2305_v7  ;;  %v1808_v13 = vpop.eup %1807  ;;  %v1064_v17 = vmul.f32 1.442695, %v2308_v11 }
 0x482   : > { %v1023_v14 = vpop.xlane.xlu1 %1022  ;;  %v1021_v15 = vpop.xlane.xlu0 %1020  ;;  %1082 = vadd.xlane.f32.xlu1 %v1806_v8  ;;  %1088 = vadd.xlane.f32.xlu0 %v1808_v13 }
 0x483   : > { %1817 = vpow2.f32 %v1066_v12  ;;  %v2312_v16 = vsub.f32 %v2264_v61, %v1023_v14  ;;  %v2316_v18 = vsub.f32 %v2266_v62, %v1021_v15 }
 0x484   : > { %1819 = vpow2.f32 %v1052_v10 }
 0x485   : > { %v1810_v46 = vpop.eup %1809  ;;  %v1070_v47 = vmul.f32 1.442695, %v2312_v16  ;;  %v1068_v52 = vmul.f32 1.442695, %v2316_v18 }
 0x486   : > { %v1812_v48 = vpop.eup %1811  ;;  %v1027_v49 = vpop.xlane.xlu1 %1026  ;;  %1080 = vadd.xlane.f32.xlu0 %v1810_v46 }
 0x487   : > { %v1025_v50 = vpop.xlane.xlu0 %1024  ;;  %1821 = vpow2.f32 %v1070_v47  ;;  %1094 = vadd.xlane.f32.xlu1 %v1812_v48  ;;  %v2320_v51 = vsub.f32 %v2268_v63, %v1027_v49 }
 0x488   : > { %1823 = vpow2.f32 %v1064_v17  ;;  %v2324_v53 = vsub.f32 %v2272_v0, %v1025_v50 }
 0x489   : > { %v1814_v54 = vpop.eup %1813  ;;  %v1074_v55 = vmul.f32 1.442695, %v2320_v51 }
 0x48a   : > { %v1816_v56 = vpop.eup %1815  ;;  %v1072_v57 = vmul.f32 1.442695, %v2324_v53 }
 0x48b   : > { %1825 = vpow2.f32 %v1074_v55  ;;  %1086 = vadd.xlane.f32.xlu1 %v1814_v54  ;;  %1092 = vadd.xlane.f32.xlu0 %v1816_v56 }
 0x48c   : > { %1827 = vpow2.f32 %v1068_v52 }
 0x48d   : > { %v1818_v58 = vpop.eup %1817  ;;  %1829 = vpow2.f32 %v1072_v57 }
 0x48e   : > { %v1820_v59 = vpop.eup %1819 }
 0x48f   : > { %1098 = vadd.xlane.f32.xlu1 %v1818_v58  ;;  %1084 = vadd.xlane.f32.xlu0 %v1820_v59 }
 0x491   : > { %v1822_v60 = vpop.eup %1821 }
 0x492   : > { %v1824_v61 = vpop.eup %1823 }
 0x493   : > { %1102 = vadd.xlane.f32.xlu1 %v1822_v60  ;;  %1096 = vadd.xlane.f32.xlu0 %v1824_v61 }
 0x495   : > { %v1826_v62 = vpop.eup %1825 }
 0x496   : > { %v1828_v63 = vpop.eup %1827 }
 0x497   : > { %1106 = vadd.xlane.f32.xlu1 %v1826_v62  ;;  %1100 = vadd.xlane.f32.xlu0 %v1828_v63  ;;  %v1830_v0 = vpop.eup %1829 }
 0x49b   : > { %1104 = vadd.xlane.f32.xlu0 %v1830_v0 }
 0x507   : > { %v1079_v1 = vpop.xlane.xlu1 %1078 }
 0x508   : > { %1831 = vlog2.f32 %v1079_v1 }
 0x50b   : > { %v1091_v2 = vpop.xlane.xlu1 %1090  ;;  %v1077_v19 = vpop.xlane.xlu0 %1076 }
 0x50c   : > { %1833 = vlog2.f32 %v1091_v2 }
 0x50d   : > { %1835 = vlog2.f32 %v1077_v19 }
 0x50f   : > { %v1083_v20 = vpop.xlane.xlu1 %1082  ;;  %v1089_v21 = vpop.xlane.xlu0 %1088 }
 0x510   : > { %1837 = vlog2.f32 %v1083_v20 }
 0x511   : > { %1839 = vlog2.f32 %v1089_v21 }
 0x512   : > { %v1832_v24 = vpop.eup %1831 }
 0x513   : > { %v1111_v27 = vmul.f32 0.6931472, %v1832_v24  ;;  %v1081_v29 = vpop.xlane.xlu0 %1080 }
 0x514   : > { %v1095_v28 = vpop.xlane.xlu1 %1094 }
 0x515   : > { %1841 = vlog2.f32 %v1095_v28  ;;  %v1141_v30 = vsub.f32 %v2278_v9, %v1111_v27 }
 0x516   : > { %1843 = vlog2.f32 %v1081_v29  ;;  %v1834_v32 = vpop.eup %1833 }
 0x517   : > { %v1836_v22 = vpop.eup %1835  ;;  %1157 = vst [vmem:[%s2332_s14 + $0x8] sm:$0xff] %v1141_v30  ;;  %v1123_v33 = vmul.f32 0.6931472, %v1834_v32 }
 0x518   : > { %v1087_v35 = vpop.xlane.xlu1 %1086  ;;  %v1093_v37 = vpop.xlane.xlu0 %1092  ;;  %v1109_v38 = vmul.f32 0.6931472, %v1836_v22 }
 0x519   : > { %1845 = vlog2.f32 %v1087_v35  ;;  %v1147_v39 = vsub.f32 %v2276_v3, %v1123_v33 }
 0x51a   : > { %1847 = vlog2.f32 %v1093_v37  ;;  %v1838_v40 = vpop.eup %1837  ;;  %v1140_v9 = vsub.f32 %v2284_v26, %v1109_v38 }
 0x51b   : > { %v1840_v42 = vpop.eup %1839  ;;  %1163 = vst [vmem:[%s2332_s14 + $0x38] sm:$0xff] %v1147_v39  ;;  %v1115_v44 = vmul.f32 0.6931472, %v1838_v40 }
 0x51c   : > { %v1099_v45 = vpop.xlane.xlu1 %1098  ;;  %v1085_v4 = vpop.xlane.xlu0 %1084  ;;  %1156 = vst [vmem:[%s2332_s14] sm:$0xff] %v1140_v9  ;;  %v1121_v5 = vmul.f32 0.6931472, %v1840_v42 }
 0x51d   : > { %1849 = vlog2.f32 %v1099_v45  ;;  %v1143_v6 = vsub.f32 %v2282_v25, %v1115_v44 }
 0x51e   : > { %1851 = vlog2.f32 %v1085_v4  ;;  %v1146_v3 = vsub.f32 %v2288_v23, %v1121_v5 }
 0x51f   : > { %v1842_v10 = vpop.eup %1841  ;;  %1159 = vst [vmem:[%s2332_s14 + $0x18] sm:$0xff] %v1143_v6 }
 0x520   : > { %v1844_v8 = vpop.eup %1843  ;;  %v1127_v26 = vmul.f32 0.6931472, %v1842_v10  ;;  %v1103_v12 = vpop.xlane.xlu1 %1102  ;;  %1162 = vst [vmem:[%s2332_s14 + $0x30] sm:$0xff] %v1146_v3 }
 0x521   : > { %v1097_v13 = vpop.xlane.xlu0 %1096  ;;  %v1113_v14 = vmul.f32 0.6931472, %v1844_v8  ;;  %1853 = vlog2.f32 %v1103_v12 }
 0x522   : > { %v1149_v15 = vsub.f32 %v2290_v31, %v1127_v26  ;;  %1855 = vlog2.f32 %v1097_v13 }
 0x523   : > { %v1846_v17 = vpop.eup %1845  ;;  %v1142_v25 = vsub.f32 %v2293_v34, %v1113_v14 }
 0x524   : > { %v1848_v46 = vpop.eup %1847  ;;  %1165 = vst [vmem:[%s2332_s14 + $0x48] sm:$0xff] %v1149_v15  ;;  %v1119_v23 = vmul.f32 0.6931472, %v1846_v17  ;;  %v1107_v47 = vpop.xlane.xlu1 %1106 }
 0x525   : > { %v1101_v48 = vpop.xlane.xlu0 %1100  ;;  %1158 = vst [vmem:[%s2332_s14 + $0x10] sm:$0xff] %v1142_v25  ;;  %v1125_v49 = vmul.f32 0.6931472, %v1848_v46  ;;  %1857 = vlog2.f32 %v1107_v47 }
 0x526   : > { %v1145_v50 = vsub.f32 %v2299_v41, %v1119_v23  ;;  %1859 = vlog2.f32 %v1101_v48 }
 0x527   : > { %v1850_v31 = vpop.eup %1849  ;;  %v1148_v52 = vsub.f32 %v2296_v36, %v1125_v49 }
 0x528   : > { %v1852_v54 = vpop.eup %1851  ;;  %1161 = vst [vmem:[%s2332_s14 + $0x28] sm:$0xff] %v1145_v50  ;;  %v1131_v34 = vmul.f32 0.6931472, %v1850_v31 }
 0x529   : > { %v1105_v55 = vpop.xlane.xlu0 %1104  ;;  %1164 = vst [vmem:[%s2332_s14 + $0x40] sm:$0xff] %v1148_v52  ;;  %v1117_v56 = vmul.f32 0.6931472, %v1852_v54 }
 0x52a   : > { %1861 = vlog2.f32 %v1105_v55  ;;  %v1151_v57 = vsub.f32 %v2305_v7, %v1131_v34 }
 0x52b   : > { %v1854_v58 = vpop.eup %1853  ;;  %v1144_v41 = vsub.f32 %v2302_v43, %v1117_v56 }
 0x52c   : > { %v1856_v59 = vpop.eup %1855  ;;  %1167 = vst [vmem:[%s2332_s14 + $0x58] sm:$0xff] %v1151_v57  ;;  %v1135_v60 = vmul.f32 0.6931472, %v1854_v58 }
 0x52d   : > { %1160 = vst [vmem:[%s2332_s14 + $0x20] sm:$0xff] %v1144_v41  ;;  %v1129_v36 = vmul.f32 0.6931472, %v1856_v59 }
 0x52e   : > { %v1153_v61 = vsub.f32 %v2312_v16, %v1135_v60 }
 0x52f   : > { %v1858_v62 = vpop.eup %1857  ;;  %v1150_v63 = vsub.f32 %v2308_v11, %v1129_v36 }
 0x530   : > { %v1860_v0 = vpop.eup %1859  ;;  %1169 = vst [vmem:[%s2332_s14 + $0x68] sm:$0xff] %v1153_v61  ;;  %v1139_v7 = vmul.f32 0.6931472, %v1858_v62 }
 0x531   : > { %1166 = vst [vmem:[%s2332_s14 + $0x50] sm:$0xff] %v1150_v63  ;;  %v1133_v43 = vmul.f32 0.6931472, %v1860_v0 }
 0x532   : > { %v1155_v1 = vsub.f32 %v2320_v51, %v1139_v7 }
 0x533   : > { %v1152_v19 = vsub.f32 %v2316_v18, %v1133_v43 }
 0x534   : > { %v1862_v2 = vpop.eup %1861  ;;  %1171 = vst [vmem:[%s2332_s14 + $0x78] sm:$0xff] %v1155_v1 }
 0x535   : > { %v1137_v16 = vmul.f32 0.6931472, %v1862_v2  ;;  %1168 = vst [vmem:[%s2332_s14 + $0x60] sm:$0xff] %v1152_v19 }
 0x537   : > { %v1154_v11 = vsub.f32 %v2324_v53, %v1137_v16 }
 0x539   : > { %1170 = vst [vmem:[%s2332_s14 + $0x70] sm:$0xff] %v1154_v11 }
 0x53a   : > { %1904 = shalt.err (!%p1901_p7)
}
 0x53b   : > { %s1905_s29 = scalar_lea.hbm %s2368_s18, 2048  ;;  %s1909_s13 = scalar_lea.hbm %s2423_s6, 8192 }
 0x53c   : > { %p1906_p8 = scmp.ne.s32.totalorder %s2368_s18, %s1905_s29  ;;  %p1910_p1 = scmp.lt.u32.totalorder %s2368_s18, %s2423_s6 }
 0x53d   : > { %p1911_p0 = scmp.lt.u32.totalorder %s1909_s13, %s1905_s29  ;;  %p1913_p6 = scmp.lt.u32.totalorder %s1905_s29, %s2368_s18 }
 0x53e   : > { %p1907_p11 = pnand %p1906_p8, %p2434_p9 }
 0x53f   : > { %p1912_p5 = por %p1911_p0, %p1910_p1 }
 0x540   : > { %p1908_p13 = pneg %p1907_p11 }
 0x541   : > { %p1914_p10 = por %p1913_p6, %p1912_p5 }
 0x543   : > { %p1915_p12 = pnand %p1914_p10, %p1908_p13 }
 0x545   : > { %1918 = shalt.err (!%p1915_p12)
}
 0x546   : > { %s1963_s11 = smov 128   ;;  %s1964_s15 = smov 8  }
 0x547   : > { %1749 = dma.vmem_to_hbm [thread:$0]  (%p2434_p9), %s2370_s9, 2048, %s2368_s18, %s2376_s25, %s1963_s11, %s1963_s11, %s1964_s15  }
 0x548 PF: > { %p1761_p2 = scmp.ge.s32.totalorder %s1957_s24, 2  ;;  %s1201_s16 = sand.u32 1, %s1945_s21  }
 0x549   : > { %p2435_p3 = scmp.ne.s32.totalorder %s2428_s8, 0  ;;  %s1202_s19 = scalar_lea.sflag [#allocation4], %s1201_s16 }
 0x54b   : > { %p1756_p4 = pnand %p1761_p2, %p2435_p3 }
 0x54d   : > { %1940 = dma.done.wait (!%p1756_p4), %s1202_s19, 2048  }
 0x54e   : > { %1942 = vsyncadd (!%p1756_p4), %s1202_s19, 4294965248  ;;  %p17_p7 = scmp.ge.s32.totalorder %s2025_s27, 6   ;;  %s2436_s21 = smov %s1949_s22 }
 0x54f   : > { %s2437_s22 = smov %s1953_s23  ;;  %s2438_s23 = smov %s2036_s30 }
 0x550   : > { %s2439_s24 = smov %s2025_s27  ;;  %19 = sbr.rel (!%p17_p7) target bundleno = 4 (0x4), region = 87 }
 0x557   :  { %1207 = vsyncpa [#allocation3], 1 }
 0x558   :  { %1209 = vsyncpa [#allocation3 + $0x1], 1 }
 0x559   :  { %1210 = vsyncpa [#allocation4], 1 }
 0x55a   :  { %1212 = vsyncpa [#allocation4 + $0x1], 1 }

</bundles_post_ra>
